<compile_context>
chip_gen: v7x
topology: tpu7x:2x2x1
jax: 0.10.0
libtpu: 0.0.40
codegen_flags: <defaults>
</compile_context>

<pallas_src>
import functools

import jax
import jax.numpy as jnp
from jax.experimental import pallas as pl
from jax.experimental.pallas import tpu as pltpu

EPS = 1e-5


def _stats_kernel(x_ref, w_ref, b_ref, scale_ref, shift_ref, sum_ref, sq_ref,
                  *, inv_count):
    # x_ref: (1, TC, HW) f32; w_ref/b_ref: (TC, 1) f32
    # scale_ref/shift_ref (outputs): (TC, 1) f32, resident across the N axis
    ni = pl.program_id(1)

    @pl.when(ni == 0)
    def _init():
        sum_ref[...] = jnp.zeros_like(sum_ref)
        sq_ref[...] = jnp.zeros_like(sq_ref)

    x = x_ref[0].astype(jnp.float32)                        # (TC, HW)
    sum_ref[...] += jnp.sum(x, axis=1, keepdims=True)       # (TC, 1)
    sq_ref[...] += jnp.sum(x * x, axis=1, keepdims=True)    # (TC, 1)

    @pl.when(ni == pl.num_programs(1) - 1)
    def _finalize():
        mean = sum_ref[...] * inv_count
        # Biased variance via E[x^2] - mean^2 (single read of x per tile).
        # f32 accumulators; acceptable cancellation for BN-scale activations.
        var = sq_ref[...] * inv_count - mean * mean
        inv = jax.lax.rsqrt(var + EPS)
        a = w_ref[...] * inv
        scale_ref[...] = a
        shift_ref[...] = b_ref[...] - mean * a


def _normalize_kernel(x_ref, scale_ref, shift_ref, o_ref):
    # x_ref/o_ref: (1, TC, HW); scale_ref/shift_ref: (TC, 1)
    # Affine folded into per-channel scale/shift -> 2 VALU ops per element.
    o_ref[0] = (x_ref[0] * scale_ref[...] + shift_ref[...]).astype(o_ref.dtype)


def batchnorm2d(x_nchw, weight, bias, *, tc=64):
    """x_nchw: (N, C, H, W); weight, bias: (C,). Training-mode BN forward."""
    n, c, h, w = x_nchw.shape
    hw = h * w
    assert c % tc == 0 and tc % 8 == 0, "channel tile must divide C and be /8"

    x3d = x_nchw.reshape(n, c, hw)                 # free view of NCHW
    w2d = weight.reshape(c, 1).astype(jnp.float32)
    b2d = bias.reshape(c, 1).astype(jnp.float32)
    inv_count = 1.0 / float(n * hw)

    vmem_limit = 32 * 1024 * 1024  # explicit cap; safe on v5e/v6e/v7x

    # ---- Pass 1: per-channel folded scale/shift (reduction over N, last axis).
    scale, shift = pl.pallas_call(
        functools.partial(_stats_kernel, inv_count=inv_count),
        out_shape=(
            jax.ShapeDtypeStruct((c, 1), jnp.float32),
            jax.ShapeDtypeStruct((c, 1), jnp.float32),
        ),
        grid_spec=pltpu.PrefetchScalarGridSpec(
            num_scalar_prefetch=0,
            grid=(c // tc, n),
            in_specs=[
                pl.BlockSpec((1, tc, hw), lambda ci, ni: (ni, ci, 0)),
                pl.BlockSpec((tc, 1), lambda ci, ni: (ci, 0)),
                pl.BlockSpec((tc, 1), lambda ci, ni: (ci, 0)),
            ],
            out_specs=[
                pl.BlockSpec((tc, 1), lambda ci, ni: (ci, 0)),
                pl.BlockSpec((tc, 1), lambda ci, ni: (ci, 0)),
            ],
            scratch_shapes=[
                pltpu.VMEM((tc, 1), jnp.float32),
                pltpu.VMEM((tc, 1), jnp.float32),
            ],
        ),
        compiler_params=pltpu.CompilerParams(
            dimension_semantics=("parallel", "arbitrary"),
            vmem_limit_bytes=vmem_limit,
        ),
    )(x3d, w2d, b2d)

    # ---- Pass 2: elementwise normalize, fully parallel (megacore on v7x).
    out3d = pl.pallas_call(
        _normalize_kernel,
        out_shape=jax.ShapeDtypeStruct((n, c, hw), x_nchw.dtype),
        grid_spec=pltpu.PrefetchScalarGridSpec(
            num_scalar_prefetch=0,
            grid=(n, c // tc),
            in_specs=[
                pl.BlockSpec((1, tc, hw), lambda ni, ci: (ni, ci, 0)),
                pl.BlockSpec((tc, 1), lambda ni, ci: (ci, 0)),
                pl.BlockSpec((tc, 1), lambda ni, ci: (ci, 0)),
            ],
            out_specs=pl.BlockSpec((1, tc, hw), lambda ni, ci: (ni, ci, 0)),
        ),
        compiler_params=pltpu.CompilerParams(
            dimension_semantics=("parallel", "parallel"),
            vmem_limit_bytes=vmem_limit,
        ),
    )(x3d, scale, shift)

    return out3d.reshape(n, c, h, w)


def _reference(x_nchw, weight, bias):
    xf = x_nchw.astype(jnp.float32)
    mean = jnp.mean(xf, axis=(0, 2, 3), keepdims=True)
    var = jnp.mean((xf - mean) ** 2, axis=(0, 2, 3), keepdims=True)
    y = (xf - mean) * jax.lax.rsqrt(var + EPS)
    return (y * weight.reshape(1, -1, 1, 1) + bias.reshape(1, -1, 1, 1)).astype(
        x_nchw.dtype
    )


if __name__ == "__main__":
    key = jax.random.PRNGKey(0)
    # Shape from the original module spec: x74 = randn([1, 192, 28, 28]).
    N, C, H, W = 1, 192, 28, 28
    x = jax.random.normal(key, (N, C, H, W), dtype=jnp.float32)

    # PyTorch BatchNorm2d default parameter init: weight = ones, bias = zeros.
    weight = jnp.ones((C,), dtype=jnp.float32)
    bias = jnp.zeros((C,), dtype=jnp.float32)

    out = batchnorm2d(x, weight, bias)
    out = jax.block_until_ready(out)

    ref = _reference(x, weight, bias)
    assert out.shape == (N, C, H, W)
    assert jnp.allclose(out, ref, atol=1e-4, rtol=1e-5), "mismatch vs reference"
    print("KERNEL_OK")
</pallas_src>

<mosaic_0001>
module attributes {stable_mosaic.version = 11 : i64} {
  func.func @_stats_kernel(%arg0: i32, %arg1: i32, %arg2: memref<1x64x784xf32, #tpu.memory_space<vmem>>, %arg3: memref<64x1xf32, #tpu.memory_space<vmem>>, %arg4: memref<64x1xf32, #tpu.memory_space<vmem>>, %arg5: memref<64x1xf32, #tpu.memory_space<vmem>>, %arg6: memref<64x1xf32, #tpu.memory_space<vmem>>, %arg7: memref<64x1xf32, #tpu.memory_space<vmem>>, %arg8: memref<64x1xf32, #tpu.memory_space<vmem>>) attributes {dimension_semantics = [#tpu.dimension_semantics<parallel>, #tpu.dimension_semantics<arbitrary>], iteration_bounds = array<i64: 3, 1>, scalar_prefetch = 0 : i64, scratch_operands = 2 : i64, tpu.core_type = #tpu.core_type<tc>, window_params = [{transform_indices = @transform_0, window_bounds = array<i64: 1, 64, 784>}, {transform_indices = @transform_1, window_bounds = array<i64: 64, 1>}, {transform_indices = @transform_2, window_bounds = array<i64: 64, 1>}, {transform_indices = @transform_3, window_bounds = array<i64: 64, 1>}, {transform_indices = @transform_4, window_bounds = array<i64: 64, 1>}]} {
    %c0_i32 = arith.constant 0 : i32
    %0 = arith.cmpi eq, %arg1, %c0_i32 : i32
    %1 = arith.extui %0 : i1 to i32
    %c0_i32_0 = arith.constant 0 : i32
    %2 = arith.cmpi ne, %1, %c0_i32_0 : i32
    scf.if %2 {
      %cst_14 = arith.constant 0.000000e+00 : f32
      %19 = vector.broadcast %cst_14 : f32 to vector<64x1xf32>
      %c0_15 = arith.constant 0 : index
      %c0_16 = arith.constant 0 : index
      %20 = vector.load %arg7[%c0_15, %c0_16] : memref<64x1xf32, #tpu.memory_space<vmem>>, vector<64x1xf32>
      tpu.vector_store %arg7[%c0_15, %c0_16], %19 {strides = array<i32>} : memref<64x1xf32, #tpu.memory_space<vmem>>, vector<64x1xf32>,
      %cst_17 = arith.constant 0.000000e+00 : f32
      %21 = vector.broadcast %cst_17 : f32 to vector<64x1xf32>
      %c0_18 = arith.constant 0 : index
      %c0_19 = arith.constant 0 : index
      %22 = vector.load %arg8[%c0_18, %c0_19] : memref<64x1xf32, #tpu.memory_space<vmem>>, vector<64x1xf32>
      tpu.vector_store %arg8[%c0_18, %c0_19], %21 {strides = array<i32>} : memref<64x1xf32, #tpu.memory_space<vmem>>, vector<64x1xf32>,
    } else {
    }
    %c0 = arith.constant 0 : index
    %c0_1 = arith.constant 0 : index
    %c0_2 = arith.constant 0 : index
    %3 = vector.load %arg2[%c0, %c0_1, %c0_2] : memref<1x64x784xf32, #tpu.memory_space<vmem>>, vector<1x64x784xf32>
    %4 = vector.shape_cast %3 : vector<1x64x784xf32> to vector<64x784xf32>
    %c0_3 = arith.constant 0 : index
    %c0_4 = arith.constant 0 : index
    %5 = vector.load %arg7[%c0_3, %c0_4] : memref<64x1xf32, #tpu.memory_space<vmem>>, vector<64x1xf32>
    %cst = arith.constant dense<0.000000e+00> : vector<64xf32>
    %6 = vector.multi_reduction <add>, %4, %cst [1] : vector<64x784xf32> to vector<64xf32>
    %7 = vector.shape_cast %6 : vector<64xf32> to vector<64x1xf32>
    %8 = arith.addf %5, %7 : vector<64x1xf32>
    %c0_5 = arith.constant 0 : index
    %c0_6 = arith.constant 0 : index
    %9 = vector.load %arg7[%c0_5, %c0_6] : memref<64x1xf32, #tpu.memory_space<vmem>>, vector<64x1xf32>
    tpu.vector_store %arg7[%c0_5, %c0_6], %8 {strides = array<i32>} : memref<64x1xf32, #tpu.memory_space<vmem>>, vector<64x1xf32>,
    %c0_7 = arith.constant 0 : index
    %c0_8 = arith.constant 0 : index
    %10 = vector.load %arg8[%c0_7, %c0_8] : memref<64x1xf32, #tpu.memory_space<vmem>>, vector<64x1xf32>
    %11 = arith.mulf %4, %4 : vector<64x784xf32>
    %cst_9 = arith.constant dense<0.000000e+00> : vector<64xf32>
    %12 = vector.multi_reduction <add>, %11, %cst_9 [1] : vector<64x784xf32> to vector<64xf32>
    %13 = vector.shape_cast %12 : vector<64xf32> to vector<64x1xf32>
    %14 = arith.addf %10, %13 : vector<64x1xf32>
    %c0_10 = arith.constant 0 : index
    %c0_11 = arith.constant 0 : index
    %15 = vector.load %arg8[%c0_10, %c0_11] : memref<64x1xf32, #tpu.memory_space<vmem>>, vector<64x1xf32>
    tpu.vector_store %arg8[%c0_10, %c0_11], %14 {strides = array<i32>} : memref<64x1xf32, #tpu.memory_space<vmem>>, vector<64x1xf32>,
    %c0_i32_12 = arith.constant 0 : i32
    %16 = arith.cmpi eq, %arg1, %c0_i32_12 : i32
    %17 = arith.extui %16 : i1 to i32
    %c0_i32_13 = arith.constant 0 : i32
    %18 = arith.cmpi ne, %17, %c0_i32_13 : i32
    scf.if %18 {
      %c0_14 = arith.constant 0 : index
      %c0_15 = arith.constant 0 : index
      %19 = vector.load %arg7[%c0_14, %c0_15] : memref<64x1xf32, #tpu.memory_space<vmem>>, vector<64x1xf32>
      %cst_16 = arith.constant 0.00127551018 : f32
      %20 = vector.broadcast %cst_16 : f32 to vector<64x1xf32>
      %21 = arith.mulf %19, %20 : vector<64x1xf32>
      %c0_17 = arith.constant 0 : index
      %c0_18 = arith.constant 0 : index
      %22 = vector.load %arg8[%c0_17, %c0_18] : memref<64x1xf32, #tpu.memory_space<vmem>>, vector<64x1xf32>
      %cst_19 = arith.constant 0.00127551018 : f32
      %23 = vector.broadcast %cst_19 : f32 to vector<64x1xf32>
      %24 = arith.mulf %22, %23 : vector<64x1xf32>
      %25 = arith.mulf %21, %21 : vector<64x1xf32>
      %26 = arith.subf %24, %25 : vector<64x1xf32>
      %cst_20 = arith.constant 9.99999974E-6 : f32
      %27 = vector.broadcast %cst_20 : f32 to vector<64x1xf32>
      %28 = arith.addf %26, %27 : vector<64x1xf32>
      %29 = math.rsqrt %28 : vector<64x1xf32>
      %c0_21 = arith.constant 0 : index
      %c0_22 = arith.constant 0 : index
      %30 = vector.load %arg3[%c0_21, %c0_22] : memref<64x1xf32, #tpu.memory_space<vmem>>, vector<64x1xf32>
      %31 = arith.mulf %30, %29 : vector<64x1xf32>
      %c0_23 = arith.constant 0 : index
      %c0_24 = arith.constant 0 : index
      %32 = vector.load %arg5[%c0_23, %c0_24] : memref<64x1xf32, #tpu.memory_space<vmem>>, vector<64x1xf32>
      tpu.vector_store %arg5[%c0_23, %c0_24], %31 {strides = array<i32>} : memref<64x1xf32, #tpu.memory_space<vmem>>, vector<64x1xf32>,
      %c0_25 = arith.constant 0 : index
      %c0_26 = arith.constant 0 : index
      %33 = vector.load %arg4[%c0_25, %c0_26] : memref<64x1xf32, #tpu.memory_space<vmem>>, vector<64x1xf32>
      %34 = arith.mulf %21, %31 : vector<64x1xf32>
      %35 = arith.subf %33, %34 : vector<64x1xf32>
      %c0_27 = arith.constant 0 : index
      %c0_28 = arith.constant 0 : index
      %36 = vector.load %arg6[%c0_27, %c0_28] : memref<64x1xf32, #tpu.memory_space<vmem>>, vector<64x1xf32>
      tpu.vector_store %arg6[%c0_27, %c0_28], %35 {strides = array<i32>} : memref<64x1xf32, #tpu.memory_space<vmem>>, vector<64x1xf32>,
    } else {
    }
    return
  }
  func.func @transform_0(%arg0: i32, %arg1: i32) -> (i32, i32, i32) {
    %c0_i32 = arith.constant 0 : i32
    %c0_i32_0 = arith.constant 0 : i32
    return %arg1, %arg0, %c0_i32 : i32, i32, i32
  }
  func.func @transform_1(%arg0: i32, %arg1: i32) -> (i32, i32) {
    %c0_i32 = arith.constant 0 : i32
    %c0_i32_0 = arith.constant 0 : i32
    return %arg0, %c0_i32 : i32, i32
  }
  func.func @transform_2(%arg0: i32, %arg1: i32) -> (i32, i32) {
    %c0_i32 = arith.constant 0 : i32
    %c0_i32_0 = arith.constant 0 : i32
    return %arg0, %c0_i32 : i32, i32
  }
  func.func @transform_3(%arg0: i32, %arg1: i32) -> (i32, i32) {
    %c0_i32 = arith.constant 0 : i32
    %c0_i32_0 = arith.constant 0 : i32
    return %arg0, %c0_i32 : i32, i32
  }
  func.func @transform_4(%arg0: i32, %arg1: i32) -> (i32, i32) {
    %c0_i32 = arith.constant 0 : i32
    %c0_i32_0 = arith.constant 0 : i32
    return %arg0, %c0_i32 : i32, i32
  }
}

</mosaic_0001>

<bundles_post_ra>
// kernel: tpu_custom_call.1
= control target key start
LH: loop header
LB: loop body
LE: loop exit
PB: predicated region body
PF: predicated region fallthrough
CT: control target
= control target key end

     0   :  { %10 = vsyncpa [#allocation5], 0  ;;  %s1639_s0 = inlined_call_operand.hbm [shape: f32[1,192,784], index: 0, kind: input, shape index: {}]   ;;  %s1640_s1 = inlined_call_operand.vmem [shape: f32[192,1], index: 1, kind: input, shape index: {}]   ;;  %s1641_s2 = inlined_call_operand.vmem [shape: f32[192,1], index: 2, kind: input, shape index: {}]   ;;  %s1642_s3 = inlined_call_operand.vmem [shape: f32[192,1], index: 3, kind: output, shape index: {0}]   ;;  %s1643_s4 = inlined_call_operand.vmem [shape: f32[192,1], index: 4, kind: output, shape index: {1}]  }
   0x1   :  { %12 = vsyncpa [#allocation5 + $0x1], 0  ;;  %s1088_s15 = smov 0   ;;  %s1090_s16 = smov 0  }
   0x2   :  { %s1092_s17 = smov 0   ;;  %s1094_s18 = smov 0  }
   0x3   :  { %s1096_s19 = smov 0   ;;  %s1098_s20 = smov 0  }
   0x4 LB: > { %s882_s21 = sadd.s32 4294967295, %s1057_s20   ;;  %s30_s22 = sadd.s32 1, %s1053_s19  ;;  %s1057_s20 = sphi %s1098_s20, %s18_s20   ;;  %s1053_s19 = sphi %s1096_s19, %s1651_s19   ;;  %s1049_s18 = sphi %s1094_s18, %s1650_s18   ;;  %s1045_s17 = sphi %s1092_s17, %s1649_s17   ;;  %s1041_s16 = sphi %s1090_s16, %s1648_s16   ;;  %s1037_s15 = sphi %s1088_s15, %s1647_s15  }
   0x5   : > { %p32_p0 = scmp.ge.s32.totalorder %s30_s22, 3  ;;  %s39_s23 = sadd.s32 1, %s1045_s17 }
   0x6   : > { %p46_p1 = scmp.ne.s32.totalorder %s1045_s17, %s1041_s16  ;;  %p47_p2 = scmp.eq.s32.totalorder %s1057_s20, 0 }
   0x7   : > { %s1653_s22 = smov (%p32_p0, %s30_s22), 0  ;;  %p52_p4 = scmp.ne.s32.totalorder %s1041_s16, %s1037_s15 }
   0x8   : > { %p48_p3 = por %p47_p2, %p46_p1  ;;  %s35_s24 = ssub.s32 %s1053_s19, %s1653_s22 }
   0x9   : > { %p53_p5 = scmp.eq.s32.totalorder %s882_s21, 0  ;;  %p37_p6 = scmp.eq.s32.totalorder %s35_s24, 0 }
   0xa   : > { %p909_p8 = scmp.lt.s32.totalorder %s1057_s20, 3  ;;  %s180_s27 = sand.u32 1, %s1045_s17  }
   0xb   : > { %p1127_p7 = por %p53_p5, %p52_p4  ;;  %s901_s28 = smul.u32 7168, %s1053_s19 }
   0xc   : > { %s1133_s26 = scalar_select %p37_p6, %s1045_s17, %s39_s23  }
   0xd   : > { %s900_s29 = smul.u32 448, %s180_s27  ;;  %s1140_s6 = scalar_lea.hbm %s1639_s0, %s901_s28 }
   0xe   : > { %p1142_p9 = pnand %p909_p8, %p48_p3  ;;  %s1148_s10 = scalar_lea.sflag [#allocation5], %s180_s27 }
   0xf   : > { %s184_s8 = scalar_lea.vmem [#allocation4], %s900_s29  ;;  %s977_s11 = scalar_lea.hbm %s1140_s6, 7168 }
  0x10   : > { %s194_s9 = sshll.u32 %s184_s8, 4  ;;  %p978_p10 = scmp.ne.s32.totalorder %s1140_s6, %s977_s11  ;;  %s1146_s9 = int_to_ptr.vmem [resolvable:$true] %s194_s9 }
  0x11   : > { %p979_p11 = pneg %p1142_p9  ;;  %s982_s14 = scalar_lea.hbm %s1639_s0, 21504 }
  0x12   : > { %p983_p0 = scmp.lt.u32.totalorder %s1140_s6, %s1639_s0  ;;  %p984_p1 = scmp.lt.u32.totalorder %s982_s14, %s977_s11 }
  0x13   : > { %p980_p12 = pnand %p979_p11, %p978_p10  ;;  %p986_p3 = scmp.lt.u32.totalorder %s977_s11, %s1140_s6 }
  0x14   : > { %p985_p2 = por %p984_p1, %p983_p0 }
  0x15   : > { %p981_p13 = pneg %p980_p12 }
  0x16   : > { %p987_p4 = por %p986_p3, %p985_p2 }
  0x18   : > { %p988_p5 = pnand %p987_p4, %p981_p13 }
  0x1a   : > { %991 = shalt.err (!%p988_p5)
}
  0x1b   : > { %s992_s23 = scalar_lea.vmem %s1146_s9, 7168  ;;  %s1059_s24 = smov [#allocation4]  }
  0x1c   : > { %p993_p6 = scmp.ne.s32.totalorder %s1146_s9, %s992_s23  ;;  %s997_s27 = sshll.u32 %s1059_s24, 4  ;;  %s998_s27 = int_to_ptr.vmem [resolvable:$false] %s997_s27 }
  0x1d   : > { %s999_s28 = scalar_lea.vmem %s998_s27, 14336  ;;  %p1000_p12 = scmp.lt.s32.totalorder %s1146_s9, %s998_s27 }
  0x1e   : > { %p995_p8 = pnand %p993_p6, %p979_p11  ;;  %p1001_p0 = scmp.lt.s32.totalorder %s999_s28, %s992_s23 }
  0x20   : > { %p996_p10 = pneg %p995_p8  ;;  %p1002_p1 = por %p1001_p0, %p1000_p12 }
  0x22   : > { %p1003_p2 = pnand %p1002_p1, %p996_p10 }
  0x24   : > { %1006 = shalt.err (!%p1003_p2)
}
  0x25   : > { %s1060_s29 = smov 896   ;;  %s1061_s30 = smov 56  }
  0x26   : > { %908 = dma.hbm_to_vmem [thread:$0]  (!%p1142_p9), %s1140_s6, 7168, %s1146_s9, %s1148_s10, %s1060_s29, %s1060_s29, %s1061_s30  }
  0x27   : > { %p889_p11 = scmp.ge.s32.totalorder %s1057_s20, 1  ;;  %p220_p13 = scmp.lt.s32.totalorder %s1057_s20, 4 }
  0x29   : > { %p221_p3 = pnand %p889_p11, %p220_p13 }
  0x2a   : > { %s226_s5 = sand.u32 (!%p221_p3), 1, %s1041_s16  }
  0x2b   : > { %224 = sbr.rel (%p221_p3) target bundleno = 280 (0x118), region = 32  ;;  %s227_s11 = scalar_lea.sflag (!%p221_p3), [#allocation5], %s226_s5 }
  0x2c   : > { %s902_s8 = smul.u32 (!%p221_p3), 448, %s226_s5 }
  0x2e   : > { %s1179_s12 = scalar_lea.vmem (!%p221_p3), [#allocation4], %s902_s8 }
  0x32   : > { %1032 = dma.done.wait (%p1127_p7), %s227_s11, 7168  }
  0x33   : > { %1034 = vsyncadd (%p1127_p7), %s227_s11, 4294960128  ;;  %vm299_vm0 = vcmask 7168   ;;  %v1062_v0 = vmov 0.0   ;;  %v330_v1 = vld [vmem:[%s1179_s12 + $0x70] sm:$0xff]  ;;  %v331_v2 = vld [vmem:[%s1179_s12 + $0x78] sm:$0xff]  ;;  %vm385_vm1 = vcmask 130048  }
  0x34   : > { %302 = vst.msk [vmem:[#allocation2 + $0x10] sm:$0xff] %vm299_vm0, %v1062_v0  ;;  %300 = vst.msk [vmem:[#allocation2] sm:$0xff] %vm299_vm0, %v1062_v0  ;;  %v332_v3 = vld [vmem:[%s1179_s12 + $0x80] sm:$0xff]  ;;  %v333_v4 = vld [vmem:[%s1179_s12 + $0x88] sm:$0xff]  ;;  %v399_v5 = vadd.f32 %v331_v2, %v330_v1  ;;  %v1206_v7 = vmul.f32 %v330_v1, %v330_v1  ;;  %v1208_v8 = vmul.f32 %v331_v2, %v331_v2  ;;  %s890_s25 = sshll.u32 %s1049_s18, 3 }
  0x35   : > { %301 = vst.msk [vmem:[#allocation2 + $0x8] sm:$0xff] %vm299_vm0, %v1062_v0  ;;  %303 = vst.msk [vmem:[#allocation2 + $0x18] sm:$0xff] %vm299_vm0, %v1062_v0  ;;  %v336_v6 = vld [vmem:[%s1179_s12 + $0xa0] sm:$0xff]  ;;  %v317_v10 = vld [vmem:[%s1179_s12 + $0x8] sm:$0xff]  ;;  %v1214_v14 = vmul.f32 %v332_v3, %v332_v3  ;;  %v1216_v15 = vmul.f32 %v333_v4, %v333_v4  ;;  %p1503_p7 = scmp.lt.s32.totalorder %s890_s25, 23 }
  0x36   : > { %304 = vst.msk [vmem:[#allocation2 + $0x20] sm:$0xff] %vm299_vm0, %v1062_v0  ;;  %305 = vst.msk [vmem:[#allocation2 + $0x28] sm:$0xff] %vm299_vm0, %v1062_v0  ;;  %v316_v9 = vld [vmem:[%s1179_s12] sm:$0xff]  ;;  %v334_v11 = vld [vmem:[%s1179_s12 + $0x90] sm:$0xff]  ;;  %v400_v13 = vadd.f32 %v399_v5, %v332_v3  ;;  %v479_v23 = vmul.f32 %v317_v10, %v317_v10  ;;  %v404_v26 = vsel %vm385_vm1, %v336_v6, 0.0  ;;  %v1229_v27 = vmul.f32 %v336_v6, %v336_v6 }
  0x37   : > { %306 = vst.msk [vmem:[#allocation2 + $0x30] sm:$0xff] %vm299_vm0, %v1062_v0  ;;  %307 = vst.msk [vmem:[#allocation2 + $0x38] sm:$0xff] %vm299_vm0, %v1062_v0  ;;  %v335_v12 = vld [vmem:[%s1179_s12 + $0x98] sm:$0xff]  ;;  %v318_v16 = vld [vmem:[%s1179_s12 + $0x10] sm:$0xff]  ;;  %v380_v17 = vadd.f32 %v317_v10, %v316_v9  ;;  %v1219_v18 = vmul.f32 %v334_v11, %v334_v11  ;;  %v478_v22 = vmul.f32 %v316_v9, %v316_v9  ;;  %s1655_s25 = smov (!%p1503_p7, %s890_s25), 23 }
  0x38   : > { %308 = vst.msk [vmem:[#allocation3] sm:$0xff] %vm299_vm0, %v1062_v0  ;;  %309 = vst.msk [vmem:[#allocation3 + $0x8] sm:$0xff] %vm299_vm0, %v1062_v0  ;;  %v1221_v19 = vmul.f32 %v335_v12, %v335_v12  ;;  %v319_v20 = vld [vmem:[%s1179_s12 + $0x18] sm:$0xff]  ;;  %v322_v21 = vld [vmem:[%s1179_s12 + $0x30] sm:$0xff]  ;;  %v401_v25 = vadd.f32 %v400_v13, %v333_v4  ;;  %v1240_v34 = vmul.f32 %v318_v16, %v318_v16  ;;  %s1523_s18 = sshll.u32 %s1655_s25, 3 }
  0x39   : > { %310 = vst.msk [vmem:[#allocation3 + $0x10] sm:$0xff] %vm299_vm0, %v1062_v0  ;;  %311 = vst.msk [vmem:[#allocation3 + $0x18] sm:$0xff] %vm299_vm0, %v1062_v0  ;;  %v1226_v24 = vld [vmem:[%s1179_s12 + $0xa8] sm:$0xff]  ;;  %v320_v28 = vld [vmem:[%s1179_s12 + $0x20] sm:$0xff]  ;;  %v381_v29 = vadd.f32 %v380_v17, %v318_v16  ;;  %v386_v33 = vsel %vm385_vm1, %v322_v21, 0.0  ;;  %v1242_v35 = vmul.f32 %v319_v20, %v319_v20  ;;  %v1259_v46 = vmul.f32 %v322_v21, %v322_v21  ;;  %s1534_s10 = scalar_lea.vmem %s1640_s1, %s1523_s18  ;;  %s1546_s15 = scalar_lea.vmem %s1641_s2, %s1523_s18 }
  0x3a   : > { %312 = vst.msk [vmem:[#allocation3 + $0x20] sm:$0xff] %vm299_vm0, %v1062_v0  ;;  %313 = vst.msk [vmem:[#allocation3 + $0x28] sm:$0xff] %vm299_vm0, %v1062_v0  ;;  %v1233_v30 = vld [vmem:[%s1179_s12 + $0xb0] sm:$0xff]  ;;  %v1236_v31 = vld [vmem:[%s1179_s12 + $0xb8] sm:$0xff]  ;;  %v402_v39 = vadd.f32 %v401_v25, %v334_v11  ;;  %v1252_v41 = vmul.f32 %v320_v28, %v320_v28  ;;  %v534_v51 = vadd.f32 %v479_v23, %v478_v22  ;;  %s1554_s24 = scalar_lea.vmem %s1642_s3, %s1523_s18  ;;  %s1569_s29 = scalar_lea.vmem %s1643_s4, %s1523_s18 }
  0x3b   : > { %314 = vst.msk [vmem:[#allocation3 + $0x30] sm:$0xff] %vm299_vm0, %v1062_v0  ;;  %315 = vst.msk [vmem:[#allocation3 + $0x38] sm:$0xff] %vm299_vm0, %v1062_v0  ;;  %v321_v32 = vld [vmem:[%s1179_s12 + $0x28] sm:$0xff]  ;;  %v1245_v36 = vld [vmem:[%s1179_s12 + $0xc0] sm:$0xff]  ;;  %v408_v38 = vadd.f32 %v1233_v30, %v1226_v24  ;;  %v382_v40 = vadd.f32 %v381_v29, %v319_v20 }
  0x3c   : > { %v1248_v37 = vld [vmem:[%s1179_s12 + $0xd8] sm:$0xff]  ;;  %v1254_v42 = vmul.f32 %v321_v32, %v321_v32  ;;  %v324_v44 = vld [vmem:[%s1179_s12 + $0x40] sm:$0xff]  ;;  %v325_v45 = vld [vmem:[%s1179_s12 + $0x48] sm:$0xff]  ;;  %v403_v52 = vadd.f32 %v402_v39, %v335_v12 }
  0x3d   : > { %v323_v43 = vld [vmem:[%s1179_s12 + $0x38] sm:$0xff]  ;;  %v1262_v47 = vld [vmem:[%s1179_s12 + $0xc8] sm:$0xff]  ;;  %v409_v48 = vadd.f32 %v408_v38, %v1236_v31  ;;  %v326_v49 = vld [vmem:[%s1179_s12 + $0x50] sm:$0xff]  ;;  %v383_v53 = vadd.f32 %v382_v40, %v320_v28  ;;  %v486_v58 = vmul.f32 %v324_v44, %v324_v44  ;;  %v413_v61 = vsel %vm385_vm1, %v1248_v37, 0.0 }
  0x3e   : > { %v390_v50 = vadd.f32 %v324_v44, %v323_v43  ;;  %v329_v54 = vld [vmem:[%s1179_s12 + $0x68] sm:$0xff]  ;;  %v1268_v55 = vld [vmem:[%s1179_s12 + $0x118] sm:$0xff]  ;;  %v1271_v56 = vld [vmem:[%s1179_s12 + $0x120] sm:$0xff]  ;;  %v485_v57 = vmul.f32 %v323_v43, %v323_v43  ;;  %v405_v1 = vadd.f32 %v404_v26, %v403_v52  ;;  %v487_v6 = vmul.f32 %v325_v45, %v325_v45 }
  0x3f   : > { %v1274_v59 = vld [vmem:[%s1179_s12 + $0xd0] sm:$0xff]  ;;  %v410_v60 = vadd.f32 %v409_v48, %v1245_v36  ;;  %v1280_v63 = vld [vmem:[%s1179_s12 + $0x128] sm:$0xff]  ;;  %v426_v0 = vadd.f32 %v1271_v56, %v1268_v55  ;;  %v384_v2 = vadd.f32 %v383_v53, %v321_v32  ;;  %v327_v3 = vld [vmem:[%s1179_s12 + $0x58] sm:$0xff]  ;;  %v488_v9 = vmul.f32 %v326_v49, %v326_v49 }
  0x40   : > { %v391_v62 = vadd.f32 %v390_v50, %v325_v45  ;;  %v1286_v4 = vld [vmem:[%s1179_s12 + $0x130] sm:$0xff]  ;;  %v1289_v5 = vld [vmem:[%s1179_s12 + $0xe0] sm:$0xff]  ;;  %v395_v12 = vsel %vm385_vm1, %v329_v54, 0.0  ;;  %v1294_v13 = vld [vmem:[%s1179_s12 + $0x148] sm:$0xff]  ;;  %406 = vadd.xlane.f32.xlu1 %v405_v1  ;;  %v489_v28 = vmul.f32 %v327_v3, %v327_v3  ;;  %v543_v29 = vadd.f32 %v486_v58, %v485_v57 }
  0x41   : > { %v411_v10 = vadd.f32 %v410_v60, %v1262_v47  ;;  %v427_v16 = vadd.f32 %v426_v0, %v1280_v63  ;;  %v1298_v17 = vld [vmem:[%s1179_s12 + $0xe8] sm:$0xff]  ;;  %v1301_v20 = vld [vmem:[%s1179_s12 + $0xf0] sm:$0xff]  ;;  %v387_v21 = vadd.f32 %v386_v33, %v384_v2  ;;  %v328_v22 = vld [vmem:[%s1179_s12 + $0x60] sm:$0xff]  ;;  %v431_v48 = vsel %vm385_vm1, %v1294_v13, 0.0 }
  0x42   : > { %v392_v11 = vadd.f32 %v391_v62, %v326_v49  ;;  %v1305_v23 = vld [vmem:[%s1179_s12 + $0x138] sm:$0xff]  ;;  %v417_v26 = vadd.f32 %v1298_v17, %v1289_v5  ;;  %v1315_v40 = vld [vmem:[%s1179_s12 + $0x188] sm:$0xff]  ;;  %v1318_v33 = vld [vmem:[%s1179_s12 + $0x190] sm:$0xff]  ;;  %v490_v44 = vmul.f32 %v328_v22, %v328_v22  ;;  %v544_v53 = vadd.f32 %v543_v29, %v487_v6 }
  0x43   : > { %v1308_v25 = vld [vmem:[%s1179_s12 + $0xf8] sm:$0xff]  ;;  %v412_v32 = vadd.f32 %v411_v10, %v1274_v59  ;;  %v428_v39 = vadd.f32 %v427_v16, %v1286_v4  ;;  %388 = vadd.xlane.f32.xlu0 %v387_v21  ;;  %v1324_v45 = vld [vmem:[%s1179_s12 + $0x140] sm:$0xff]  ;;  %v444_v52 = vadd.f32 %v1318_v33, %v1315_v40  ;;  %v1339_v0 = vld [vmem:[%s1179_s12 + $0x150] sm:$0xff]  ;;  %v535_v2 = vadd.f32 %v534_v51, %v1240_v34 }
  0x44   : > { %v393_v38 = vadd.f32 %v392_v11, %v327_v3  ;;  %v1321_v43 = vld [vmem:[%s1179_s12 + $0x198] sm:$0xff]  ;;  %v1329_v49 = vld [vmem:[%s1179_s12 + $0x100] sm:$0xff]  ;;  %v418_v50 = vadd.f32 %v417_v26, %v1301_v20  ;;  %v1346_v3 = vld [vmem:[%s1179_s12 + $0x110] sm:$0xff]  ;;  %v491_v16 = vmul.f32 %v329_v54, %v329_v54  ;;  %v545_v29 = vadd.f32 %v544_v53, %v488_v9 }
  0x45   : > { %v414_v57 = vadd.f32 %v413_v61, %v412_v32  ;;  %v429_v60 = vadd.f32 %v428_v39, %v1305_v23  ;;  %v1336_v62 = vld [vmem:[%s1179_s12 + $0x1a0] sm:$0xff]  ;;  %v1342_v1 = vld [vmem:[%s1179_s12 + $0x158] sm:$0xff]  ;;  %v445_v61 = vadd.f32 %v444_v52, %v1321_v43  ;;  %v1357_v34 = vld [vmem:[%s1179_s12 + $0x108] sm:$0xff]  ;;  %v536_v32 = vadd.f32 %v535_v2, %v1242_v35 }
  0x46   : > { %v394_v58 = vadd.f32 %v393_v38, %v328_v22  ;;  %v419_v6 = vadd.f32 %v418_v50, %v1308_v25  ;;  %v1351_v10 = vld [vmem:[%s1179_s12 + $0x160] sm:$0xff]  ;;  %v435_v11 = vadd.f32 %v1342_v1, %v1339_v0  ;;  %v1360_v51 = vld [vmem:[%s1179_s12 + $0x1a8] sm:$0xff]  ;;  %v1368_v39 = vld [vmem:[%s1179_s12 + $0x1b8] sm:$0xff]  ;;  %v499_v52 = vmul.f32 %v1226_v24, %v1226_v24 }
  0x47   : > { %415 = vadd.xlane.f32.xlu1 %v414_v57  ;;  %v430_v22 = vadd.f32 %v429_v60, %v1324_v45  ;;  %v1363_v26 = vld [vmem:[%s1179_s12 + $0x168] sm:$0xff]  ;;  %v446_v54 = vadd.f32 %v445_v61, %v1336_v62  ;;  %v422_v9 = vsel %vm385_vm1, %v1346_v3, 0.0  ;;  %v1380_v35 = vld [vmem:[%s1179_s12 + $0x1b0] sm:$0xff]  ;;  %v537_v60 = vadd.f32 %v536_v32, %v1252_v41 }
  0x48   : > { %v396_v21 = vadd.f32 %v395_v12, %v394_v58  ;;  %v420_v38 = vadd.f32 %v419_v6, %v1329_v49  ;;  %v1372_v12 = vld [vmem:[%s1179_s12 + $0x180] sm:$0xff]  ;;  %v436_v50 = vadd.f32 %v435_v11, %v1351_v10  ;;  %v1383_v53 = vld [vmem:[%s1179_s12 + $0x170] sm:$0xff]  ;;  %v546_v58 = vadd.f32 %v545_v29, %v489_v28  ;;  %v1394_v11 = vld [vmem:[%s1179_s12 + $0x178] sm:$0xff] }
  0x49   : > { %v432_v57 = vadd.f32 %v431_v48, %v430_v22  ;;  %v447_v6 = vadd.f32 %v446_v54, %v1360_v51  ;;  %v500_v24 = vmul.f32 %v1233_v30, %v1233_v30  ;;  %v449_v48 = vsel %vm385_vm1, %v1368_v39, 0.0 }
  0x4a   : > { %397 = vadd.xlane.f32.xlu0 %v396_v21  ;;  %v421_v2 = vadd.f32 %v420_v38, %v1357_v34  ;;  %v437_v61 = vadd.f32 %v436_v50, %v1363_v26  ;;  %v440_v28 = vsel %vm385_vm1, %v1372_v12, 0.0  ;;  %v547_v21 = vadd.f32 %v546_v58, %v490_v44 }
  0x4b   : > { %433 = vadd.xlane.f32.xlu1 %v432_v57  ;;  %v548_v41 = vsel %vm385_vm1, %v491_v16, 0.0  ;;  %v448_v29 = vadd.f32 %v447_v6, %v1380_v35  ;;  %v501_v30 = vmul.f32 %v1236_v31, %v1236_v31  ;;  %v538_v38 = vadd.f32 %v537_v60, %v1254_v42 }
  0x4c   : > { %v423_v22 = vadd.f32 %v422_v9, %v421_v2  ;;  %v438_v32 = vadd.f32 %v437_v61, %v1383_v53  ;;  %v539_v54 = vsel %vm385_vm1, %v1259_v46, 0.0  ;;  %v502_v50 = vmul.f32 %v1245_v36, %v1245_v36 }
  0x4d   : > { %v505_v44 = vmul.f32 %v1248_v37, %v1248_v37  ;;  %v450_v16 = vadd.f32 %v449_v48, %v448_v29  ;;  %v561_v9 = vadd.f32 %v500_v24, %v499_v52  ;;  %v552_v58 = vadd.f32 %v1208_v8, %v1206_v7 }
  0x4e   : > { %424 = vadd.xlane.f32.xlu0 %v423_v22  ;;  %v439_v57 = vadd.f32 %v438_v32, %v1394_v11  ;;  %v549_v31 = vadd.f32 %v548_v41, %v547_v21  ;;  %v503_v42 = vmul.f32 %v1262_v47, %v1262_v47  ;;  %v513_v46 = vmul.f32 %v1268_v55, %v1268_v55 }
  0x4f   : > { %v514_v36 = vmul.f32 %v1271_v56, %v1271_v56  ;;  %451 = vadd.xlane.f32.xlu1 %v450_v16  ;;  %v562_v60 = vadd.f32 %v561_v9, %v501_v30  ;;  %v553_v2 = vadd.f32 %v552_v58, %v1214_v14  ;;  %v515_v52 = vmul.f32 %v1280_v63, %v1280_v63 }
  0x50   : > { %v441_v37 = vadd.f32 %v440_v28, %v439_v57  ;;  %v540_v6 = vadd.f32 %v539_v54, %v538_v38  ;;  %v504_v7 = vmul.f32 %v1274_v59, %v1274_v59  ;;  %v566_v8 = vsel %vm385_vm1, %v505_v44, 0.0 }
  0x51   : > { %v516_v47 = vmul.f32 %v1286_v4, %v1286_v4  ;;  %v563_v55 = vadd.f32 %v562_v60, %v502_v50  ;;  %v554_v56 = vadd.f32 %v553_v2, %v1216_v15  ;;  %v579_v61 = vadd.f32 %v514_v36, %v513_v46 }
  0x52   : > { %442 = vadd.xlane.f32.xlu0 %v441_v37  ;;  %v506_v14 = vmul.f32 %v1289_v5, %v1289_v5  ;;  %v557_v63 = vsel %vm385_vm1, %v1229_v27, 0.0  ;;  %v519_v24 = vmul.f32 %v1294_v13, %v1294_v13  ;;  %v507_v59 = vmul.f32 %v1298_v17, %v1298_v17 }
  0x53   : > { %v508_v4 = vmul.f32 %v1301_v20, %v1301_v20  ;;  %550 = vadd.xlane.f32.xlu1 %v549_v31  ;;  %v564_v48 = vadd.f32 %v563_v55, %v503_v42  ;;  %v555_v15 = vadd.f32 %v554_v56, %v1219_v18  ;;  %v517_v28 = vmul.f32 %v1305_v23, %v1305_v23  ;;  %v372_v56 = vld [vmem:[#allocation2] sm:$0xff] }
  0x54   : > { %v580_v5 = vadd.f32 %v579_v61, %v515_v52  ;;  %v518_v27 = vmul.f32 %v1324_v45, %v1324_v45  ;;  %v509_v13 = vmul.f32 %v1308_v25, %v1308_v25  ;;  %v570_v21 = vadd.f32 %v507_v59, %v506_v14 }
  0x55   : > { %v527_v17 = vmul.f32 %v1315_v40, %v1315_v40  ;;  %v565_v20 = vadd.f32 %v564_v48, %v504_v7  ;;  %v556_v41 = vadd.f32 %v555_v15, %v1221_v19  ;;  %v528_v18 = vmul.f32 %v1318_v33, %v1318_v33  ;;  %v377_v48 = vld [vmem:[#allocation2 + $0x28] sm:$0xff] }
  0x56   : > { %541 = vadd.xlane.f32.xlu0 %v540_v6  ;;  %v581_v22 = vadd.f32 %v580_v5, %v516_v47  ;;  %v584_v23 = vsel %vm385_vm1, %v519_v24, 0.0  ;;  %v510_v45 = vmul.f32 %v1329_v49, %v1329_v49  ;;  %v571_v29 = vadd.f32 %v570_v21, %v508_v4  ;;  %v373_v24 = vld [vmem:[#allocation2 + $0x8] sm:$0xff]  ;;  %v379_v21 = vld [vmem:[#allocation2 + $0x38] sm:$0xff] }
  0x57   : > { %v529_v25 = vmul.f32 %v1321_v43, %v1321_v43  ;;  %v567_v32 = vadd.f32 %v566_v8, %v565_v20  ;;  %v558_v30 = vadd.f32 %v557_v63, %v556_v41  ;;  %v512_v38 = vmul.f32 %v1346_v3, %v1346_v3  ;;  %v375_v63 = vld [vmem:[#allocation2 + $0x18] sm:$0xff]  ;;  %v378_v41 = vld [vmem:[#allocation2 + $0x30] sm:$0xff] }
  0x58   : > { %v582_v40 = vadd.f32 %v581_v22, %v517_v28  ;;  %v511_v19 = vmul.f32 %v1357_v34, %v1357_v34  ;;  %v572_v54 = vadd.f32 %v571_v29, %v509_v13  ;;  %v530_v33 = vmul.f32 %v1336_v62, %v1336_v62 }
  0x59   : > { %v597_v50 = vadd.f32 %v528_v18, %v527_v17  ;;  %568 = vadd.xlane.f32.xlu1 %v567_v32  ;;  %v520_v43 = vmul.f32 %v1339_v0, %v1339_v0  ;;  %v521_v44 = vmul.f32 %v1342_v1, %v1342_v1  ;;  %v531_v3 = vmul.f32 %v1360_v51, %v1360_v51 }
  0x5a   : > { %559 = vadd.xlane.f32.xlu0 %v558_v30  ;;  %v583_v49 = vadd.f32 %v582_v40, %v518_v27  ;;  %v573_v16 = vadd.f32 %v572_v54, %v510_v45  ;;  %v522_v34 = vmul.f32 %v1351_v10, %v1351_v10  ;;  %v575_v62 = vsel %vm385_vm1, %v512_v38, 0.0  ;;  %v376_v27 = vld [vmem:[#allocation2 + $0x20] sm:$0xff]  ;;  %v472_v54 = vld [vmem:[#allocation3 + $0x10] sm:$0xff] }
  0x5b   : > { %v598_v57 = vadd.f32 %v597_v50, %v529_v25  ;;  %v532_v58 = vmul.f32 %v1380_v35, %v1380_v35  ;;  %v533_v0 = vmul.f32 %v1368_v39, %v1368_v39  ;;  %v523_v1 = vmul.f32 %v1363_v26, %v1363_v26  ;;  %v470_v25 = vld [vmem:[#allocation3] sm:$0xff] }
  0x5c   : > { %v585_v9 = vadd.f32 %v584_v23, %v583_v49  ;;  %v574_v31 = vadd.f32 %v573_v16, %v511_v19  ;;  %v588_v46 = vadd.f32 %v521_v44, %v520_v43  ;;  %v524_v10 = vmul.f32 %v1383_v53, %v1383_v53  ;;  %v374_v53 = vld [vmem:[#allocation2 + $0x10] sm:$0xff]  ;;  %v471_v23 = vld [vmem:[#allocation3 + $0x8] sm:$0xff]  ;;  %v473_v19 = vld [vmem:[#allocation3 + $0x18] sm:$0xff] }
  0x5d   : > { %v599_v42 = vadd.f32 %v598_v57, %v530_v33  ;;  %v602_v60 = vsel %vm385_vm1, %v533_v0, 0.0  ;;  %v526_v35 = vmul.f32 %v1372_v12, %v1372_v12  ;;  %v525_v2 = vmul.f32 %v1394_v11, %v1394_v11 }
  0x5e   : > { %586 = vadd.xlane.f32.xlu1 %v585_v9  ;;  %v576_v51 = vadd.f32 %v575_v62, %v574_v31  ;;  %v589_v37 = vadd.f32 %v588_v46, %v522_v34 }
  0x5f   : > { %v600_v36 = vadd.f32 %v599_v42, %v531_v3  ;;  %v593_v7 = vsel %vm385_vm1, %v526_v35, 0.0  ;;  %v475_v3 = vld [vmem:[#allocation3 + $0x28] sm:$0xff] }
  0x60   : > { %577 = vadd.xlane.f32.xlu0 %v576_v51  ;;  %v590_v52 = vadd.f32 %v589_v37, %v523_v1  ;;  %v474_v1 = vld [vmem:[#allocation3 + $0x20] sm:$0xff] }
  0x61   : > { %v601_v39 = vadd.f32 %v600_v36, %v532_v58 }
  0x62   : > { %v591_v6 = vadd.f32 %v590_v52, %v524_v10 }
  0x63   : > { %v603_v26 = vadd.f32 %v602_v60, %v601_v39 }
  0x64   : > { %v592_v8 = vadd.f32 %v591_v6, %v525_v2  ;;  %v477_v6 = vld [vmem:[#allocation3 + $0x38] sm:$0xff] }
  0x65   : > { %604 = vadd.xlane.f32.xlu1 %v603_v26 }
  0x66   : > { %v594_v47 = vadd.f32 %v593_v7, %v592_v8 }
  0x68   : > { %595 = vadd.xlane.f32.xlu0 %v594_v47 }
  0xcd   : > { %v407_v55 = vpop.xlane.xlu1 %406 }
  0xce   : > { %v455_v61 = vadd.f32 %v407_v55, %v374_v53 }
  0xd0   : > { %v389_v14 = vpop.xlane.xlu0 %388  ;;  %464 = vst.msk [vmem:[#allocation2 + $0x10] sm:$0xff] %vm299_vm0, %v455_v61 }
  0xd1   : > { %v453_v12 = vadd.f32 %v389_v14, %v372_v56 }
  0xd3   : > { %462 = vst.msk [vmem:[#allocation2] sm:$0xff] %vm299_vm0, %v453_v12 }
  0xd4   : > { %v416_v11 = vpop.xlane.xlu1 %415 }
  0xd5   : > { %v456_v59 = vadd.f32 %v416_v11, %v375_v63 }
  0xd7   : > { %v398_v4 = vpop.xlane.xlu0 %397  ;;  %465 = vst.msk [vmem:[#allocation2 + $0x18] sm:$0xff] %vm299_vm0, %v456_v59  ;;  %v627_v57 = vld [vmem:[#allocation2 + $0x10] sm:$0xff] }
  0xd8   : > { %v454_v15 = vadd.f32 %v398_v4, %v373_v24  ;;  %v434_v28 = vpop.xlane.xlu1 %433  ;;  %v1507_v46 = vmul.f32 0.0012755102, %v627_v57  ;;  %v476_v4 = vld [vmem:[#allocation3 + $0x30] sm:$0xff] }
  0xd9   : > { %v458_v5 = vadd.f32 %v434_v28, %v377_v48 }
  0xda   : > { %463 = vst.msk [vmem:[#allocation2 + $0x8] sm:$0xff] %vm299_vm0, %v454_v15  ;;  %v625_v33 = vld [vmem:[#allocation2] sm:$0xff]  ;;  %v659_v7 = vmul.f32 %v1507_v46, %v1507_v46 }
  0xdb   : > { %467 = vst.msk [vmem:[#allocation2 + $0x28] sm:$0xff] %vm299_vm0, %v458_v5  ;;  %v425_v13 = vpop.xlane.xlu0 %424  ;;  %v1497_v34 = vmul.f32 0.0012755102, %v625_v33 }
  0xdc   : > { %v457_v17 = vadd.f32 %v425_v13, %v376_v27  ;;  %v452_v20 = vpop.xlane.xlu1 %451 }
  0xdd   : > { %v460_v22 = vadd.f32 %v452_v20, %v379_v21  ;;  %v657_v10 = vmul.f32 %v1497_v34, %v1497_v34 }
  0xde   : > { %466 = vst.msk [vmem:[#allocation2 + $0x20] sm:$0xff] %vm299_vm0, %v457_v17  ;;  %v628_v9 = vld [vmem:[#allocation2 + $0x18] sm:$0xff] }
  0xdf   : > { %v443_v18 = vpop.xlane.xlu0 %442  ;;  %469 = vst.msk [vmem:[#allocation2 + $0x38] sm:$0xff] %vm299_vm0, %v460_v22  ;;  %v1509_v51 = vmul.f32 0.0012755102, %v628_v9 }
  0xe0   : > { %v459_v45 = vadd.f32 %v443_v18, %v378_v41  ;;  %v551_v29 = vpop.xlane.xlu1 %550 }
  0xe1   : > { %v607_v32 = vadd.f32 %v551_v29, %v471_v23  ;;  %v626_v38 = vld [vmem:[#allocation2 + $0x8] sm:$0xff]  ;;  %v660_v8 = vmul.f32 %v1509_v51, %v1509_v51 }
  0xe2   : > { %468 = vst.msk [vmem:[#allocation2 + $0x30] sm:$0xff] %vm299_vm0, %v459_v45  ;;  %v1494_v43 = vmul.f32 0.0012755102, %v626_v38  ;;  %v630_v37 = vld [vmem:[#allocation2 + $0x28] sm:$0xff] }
  0xe3   : > { %v542_v30 = vpop.xlane.xlu0 %541  ;;  %615 = vst.msk [vmem:[#allocation3 + $0x8] sm:$0xff] %vm299_vm0, %v607_v32  ;;  %v1520_v47 = vmul.f32 0.0012755102, %v630_v37 }
  0xe4   : > { %v606_v40 = vadd.f32 %v542_v30, %v470_v25  ;;  %v658_v0 = vmul.f32 %v1494_v43, %v1494_v43  ;;  %v690_v25 = vld [vmem:[%s1534_s10 + $0x8] sm:$0xff] }
  0xe5   : > { %v629_v53 = vld [vmem:[#allocation2 + $0x20] sm:$0xff]  ;;  %v662_v5 = vmul.f32 %v1520_v47, %v1520_v47 }
  0xe6   : > { %614 = vst.msk [vmem:[#allocation3] sm:$0xff] %vm299_vm0, %v606_v40  ;;  %v569_v50 = vpop.xlane.xlu1 %568  ;;  %v1525_v48 = vmul.f32 0.0012755102, %v629_v53  ;;  %v632_v15 = vld [vmem:[#allocation2 + $0x38] sm:$0xff] }
  0xe7   : > { %v560_v49 = vpop.xlane.xlu0 %559  ;;  %v609_v44 = vadd.f32 %v569_v50, %v473_v19  ;;  %v1538_v23 = vmul.f32 0.0012755102, %v632_v15  ;;  %v689_v19 = vld [vmem:[%s1534_s10] sm:$0xff]  ;;  %v696_v15 = vld [vmem:[%s1534_s10 + $0x38] sm:$0xff] }
  0xe8   : > { %v608_v16 = vadd.f32 %v560_v49, %v472_v54  ;;  %v661_v18 = vmul.f32 %v1525_v48, %v1525_v48 }
  0xe9   : > { %617 = vst.msk [vmem:[#allocation3 + $0x18] sm:$0xff] %vm299_vm0, %v609_v44  ;;  %v631_v45 = vld [vmem:[#allocation2 + $0x30] sm:$0xff]  ;;  %v664_v33 = vmul.f32 %v1538_v23, %v1538_v23 }
  0xea   : > { %616 = vst.msk [vmem:[#allocation3 + $0x10] sm:$0xff] %vm299_vm0, %v608_v16  ;;  %v642_v62 = vld [vmem:[#allocation3 + $0x8] sm:$0xff]  ;;  %v1548_v38 = vmul.f32 0.0012755102, %v631_v45 }
  0xeb   : > { %v587_v58 = vpop.xlane.xlu1 %586  ;;  %v650_v31 = vmul.f32 0.0012755102, %v642_v62 }
  0xec   : > { %v611_v42 = vadd.f32 %v587_v58, %v475_v3  ;;  %v714_v3 = vld [vmem:[%s1546_s15 + $0x8] sm:$0xff]  ;;  %v663_v58 = vmul.f32 %v1548_v38, %v1548_v38 }
  0xed   : > { %v641_v36 = vld [vmem:[#allocation3] sm:$0xff]  ;;  %v666_v60 = vsub.f32 %v650_v31, %v658_v0  ;;  %v578_v39 = vpop.xlane.xlu0 %577  ;;  %v692_v31 = vld [vmem:[%s1534_s10 + $0x18] sm:$0xff] }
  0xee   : > { %v649_v35 = vmul.f32 0.0012755102, %v641_v36  ;;  %619 = vst.msk [vmem:[#allocation3 + $0x28] sm:$0xff] %vm299_vm0, %v611_v42  ;;  %v610_v2 = vadd.f32 %v578_v39, %v474_v1  ;;  %v713_v0 = vld [vmem:[%s1546_s15] sm:$0xff]  ;;  %v691_v36 = vld [vmem:[%s1534_s10 + $0x10] sm:$0xff] }
  0xef   : > { %v674_v52 = vadd.f32 1e-05, %v666_v60 }
  0xf0   : > { %v665_v26 = vsub.f32 %v649_v35, %v657_v10  ;;  %v644_v55 = vld [vmem:[#allocation3 + $0x18] sm:$0xff]  ;;  %618 = vst.msk [vmem:[#allocation3 + $0x20] sm:$0xff] %vm299_vm0, %v610_v2 }
  0xf1   : > { %v643_v56 = vld [vmem:[#allocation3 + $0x10] sm:$0xff]  ;;  %961 = vrsqrt.f32 %v674_v52  ;;  %v652_v14 = vmul.f32 0.0012755102, %v644_v55 }
  0xf2   : > { %v673_v61 = vadd.f32 1e-05, %v665_v26  ;;  %v651_v12 = vmul.f32 0.0012755102, %v643_v56  ;;  %v605_v63 = vpop.xlane.xlu1 %604  ;;  %v716_v26 = vld [vmem:[%s1546_s15 + $0x18] sm:$0xff] }
  0xf3   : > { %v613_v11 = vadd.f32 %v605_v63, %v477_v6  ;;  %v668_v24 = vsub.f32 %v652_v14, %v660_v8  ;;  %v715_v8 = vld [vmem:[%s1546_s15 + $0x10] sm:$0xff] }
  0xf4   : > { %963 = vrsqrt.f32 %v673_v61  ;;  %v667_v59 = vsub.f32 %v651_v12, %v659_v7  ;;  %v694_v7 = vld [vmem:[%s1534_s10 + $0x28] sm:$0xff]  ;;  %v693_v12 = vld [vmem:[%s1534_s10 + $0x20] sm:$0xff] }
  0xf5   : > { %v646_v28 = vld [vmem:[#allocation3 + $0x28] sm:$0xff]  ;;  %621 = vst.msk [vmem:[#allocation3 + $0x38] sm:$0xff] %vm299_vm0, %v613_v11  ;;  %v676_v27 = vadd.f32 1e-05, %v668_v24  ;;  %v596_v17 = vpop.xlane.xlu0 %595 }
  0xf6   : > { %v675_v13 = vadd.f32 1e-05, %v667_v59  ;;  %v654_v21 = vmul.f32 0.0012755102, %v646_v28  ;;  %v612_v20 = vadd.f32 %v596_v17, %v476_v4  ;;  %v718_v11 = vld [vmem:[%s1546_s15 + $0x28] sm:$0xff]  ;;  %v717_v4 = vld [vmem:[%s1546_s15 + $0x20] sm:$0xff] }
  0xf7   : > { %965 = vrsqrt.f32 %v676_v27  ;;  %v645_v22 = vld [vmem:[#allocation3 + $0x20] sm:$0xff] }
  0xf8   : > { %v670_v41 = vsub.f32 %v654_v21, %v662_v5  ;;  %967 = vrsqrt.f32 %v675_v13  ;;  %v653_v29 = vmul.f32 0.0012755102, %v645_v22  ;;  %620 = vst.msk [vmem:[#allocation3 + $0x30] sm:$0xff] %vm299_vm0, %v612_v20  ;;  %v695_v21 = vld [vmem:[%s1534_s10 + $0x30] sm:$0xff] }
  0xfa   : > { %v678_v32 = vadd.f32 1e-05, %v670_v41  ;;  %v669_v30 = vsub.f32 %v653_v29, %v661_v18  ;;  %v719_v18 = vld [vmem:[%s1546_s15 + $0x30] sm:$0xff] }
  0xfb   : > { %v962_v40 = vpop.eup %961 }
  0xfc   : > { %969 = vrsqrt.f32 %v678_v32  ;;  %v648_v54 = vld [vmem:[#allocation3 + $0x38] sm:$0xff]  ;;  %v698_v50 = vmul.f32 %v962_v40, %v690_v25  ;;  %v677_v49 = vadd.f32 1e-05, %v669_v30 }
  0xfd   : > { %v656_v44 = vmul.f32 0.0012755102, %v648_v54 }
  0xfe   : > { %v964_v16 = vpop.eup %963  ;;  %706 = vst.msk [vmem:[%s1554_s24 + $0x8] sm:$0xff] %vm299_vm0, %v698_v50  ;;  %v722_v57 = vmul.f32 %v698_v50, %v1494_v43  ;;  %971 = vrsqrt.f32 %v677_v49 }
  0xff   : > { %v697_v9 = vmul.f32 %v964_v16, %v689_v19  ;;  %v672_v62 = vsub.f32 %v656_v44, %v664_v33  ;;  %v647_v42 = vld [vmem:[#allocation3 + $0x30] sm:$0xff] }
 0x100   : > { %v730_v1 = vsub.f32 %v714_v3, %v722_v57  ;;  %v655_v37 = vmul.f32 0.0012755102, %v647_v42 }
 0x101   : > { %705 = vst.msk [vmem:[%s1554_s24] sm:$0xff] %vm299_vm0, %v697_v9  ;;  %v721_v43 = vmul.f32 %v697_v9, %v1497_v34  ;;  %v680_v10 = vadd.f32 1e-05, %v672_v62  ;;  %v966_v60 = vpop.eup %965 }
 0x102   : > { %v968_v35 = vpop.eup %967  ;;  %738 = vst.msk [vmem:[%s1569_s29 + $0x8] sm:$0xff] %vm299_vm0, %v730_v1  ;;  %v700_v2 = vmul.f32 %v966_v60, %v692_v31  ;;  %v671_v52 = vsub.f32 %v655_v37, %v663_v58 }
 0x103   : > { %v729_v39 = vsub.f32 %v713_v0, %v721_v43  ;;  %973 = vrsqrt.f32 %v680_v10  ;;  %v699_v6 = vmul.f32 %v968_v35, %v691_v36 }
 0x104   : > { %708 = vst.msk [vmem:[%s1554_s24 + $0x18] sm:$0xff] %vm299_vm0, %v700_v2  ;;  %v724_v34 = vmul.f32 %v700_v2, %v1509_v51  ;;  %v679_v53 = vadd.f32 1e-05, %v671_v52 }
 0x105   : > { %737 = vst.msk [vmem:[%s1569_s29] sm:$0xff] %vm299_vm0, %v729_v39  ;;  %707 = vst.msk [vmem:[%s1554_s24 + $0x10] sm:$0xff] %vm299_vm0, %v699_v6  ;;  %v723_v56 = vmul.f32 %v699_v6, %v1507_v46 }
 0x106   : > { %v970_v55 = vpop.eup %969  ;;  %v732_v61 = vsub.f32 %v716_v26, %v724_v34  ;;  %975 = vrsqrt.f32 %v679_v53 }
 0x107   : > { %v702_v14 = vmul.f32 %v970_v55, %v694_v7  ;;  %v731_v63 = vsub.f32 %v715_v8, %v723_v56 }
 0x108   : > { %v972_v51 = vpop.eup %971  ;;  %740 = vst.msk [vmem:[%s1569_s29 + $0x18] sm:$0xff] %vm299_vm0, %v732_v61 }
 0x109   : > { %710 = vst.msk [vmem:[%s1554_s24 + $0x28] sm:$0xff] %vm299_vm0, %v702_v14  ;;  %v726_v24 = vmul.f32 %v702_v14, %v1520_v47  ;;  %739 = vst.msk [vmem:[%s1569_s29 + $0x10] sm:$0xff] %vm299_vm0, %v731_v63  ;;  %v701_v46 = vmul.f32 %v972_v51, %v693_v12  ;;  %v720_v47 = vld [vmem:[%s1546_s15 + $0x38] sm:$0xff] }
 0x10b   : > { %v734_v59 = vsub.f32 %v718_v11, %v726_v24  ;;  %709 = vst.msk [vmem:[%s1554_s24 + $0x20] sm:$0xff] %vm299_vm0, %v701_v46  ;;  %v725_v28 = vmul.f32 %v701_v46, %v1525_v48 }
 0x10d   : > { %v974_v5 = vpop.eup %973  ;;  %742 = vst.msk [vmem:[%s1569_s29 + $0x28] sm:$0xff] %vm299_vm0, %v734_v59  ;;  %v733_v27 = vsub.f32 %v717_v4, %v725_v28 }
 0x10e   : > { %v704_v13 = vmul.f32 %v974_v5, %v696_v15 }
 0x10f   : > { %741 = vst.msk [vmem:[%s1569_s29 + $0x20] sm:$0xff] %vm299_vm0, %v733_v27 }
 0x110   : > { %712 = vst.msk [vmem:[%s1554_s24 + $0x38] sm:$0xff] %vm299_vm0, %v704_v13  ;;  %v728_v17 = vmul.f32 %v704_v13, %v1538_v23  ;;  %v976_v20 = vpop.eup %975 }
 0x111   : > { %v703_v22 = vmul.f32 %v976_v20, %v695_v21 }
 0x112   : > { %v736_v41 = vsub.f32 %v720_v47, %v728_v17 }
 0x113   : > { %711 = vst.msk [vmem:[%s1554_s24 + $0x30] sm:$0xff] %vm299_vm0, %v703_v22  ;;  %v727_v48 = vmul.f32 %v703_v22, %v1548_v38 }
 0x114   : > { %744 = vst.msk [vmem:[%s1569_s29 + $0x38] sm:$0xff] %vm299_vm0, %v736_v41 }
 0x115   : > { %v735_v45 = vsub.f32 %v719_v18, %v727_v48 }
 0x117   : > { %743 = vst.msk [vmem:[%s1569_s29 + $0x30] sm:$0xff] %vm299_vm0, %v735_v45 }
 0x118 PF: > { %s18_s20 = sadd.s32 1, %s1057_s20   ;;  %s1647_s15 = smov %s1041_s16 }
 0x119   : > { %p15_p9 = scmp.ge.s32.totalorder %s18_s20, 5   ;;  %s1648_s16 = smov %s1045_s17 }
 0x11a   : > { %s1649_s17 = smov %s1133_s26  ;;  %s1650_s18 = smov %s1053_s19 }
 0x11b   : > { %s1651_s19 = smov %s1653_s22  ;;  %17 = sbr.rel (!%p15_p9) target bundleno = 4 (0x4), region = 98 }
 0x122   :  { %784 = vsyncpa [#allocation5], 1 }
 0x123   :  { %786 = vsyncpa [#allocation5 + $0x1], 1 }

</bundles_post_ra>
